<compile_context>
chip_gen: v7x
topology: tpu7x:2x2x1
jax: 0.10.0
libtpu: 0.0.40
codegen_flags: <defaults>
</compile_context>

<pallas_src>
import functools

import jax
import jax.numpy as jnp
from jax import lax
from jax.experimental import pallas as pl
from jax.experimental.pallas import tpu as pltpu


def _round_up(x, m):
    return (x + m - 1) // m * m


# ---------------------------------------------------------------------------
# Fused Pallas kernel: image encode (K-tiled) + text project + normalize +
# scaled similarity + softmax.
# ---------------------------------------------------------------------------

def _fused_prompter_kernel(x_ref, wimg_ref, txt_ref, wtxt_ref, o_ref, acc_ref,
                           *, n_text):
    k = pl.program_id(0)

    # Zero the image-feature accumulator on the first K tile.
    @pl.when(k == 0)
    def _():
        acc_ref[...] = jnp.zeros_like(acc_ref)

    # Stream one (Bp, tk) x (tk, D) tile of the image encoder (bf16 in,
    # f32 accumulate on the MXU).
    acc_ref[...] += jnp.dot(x_ref[...], wimg_ref[...],
                            preferred_element_type=jnp.float32)

    # Finalize on the last K tile: text projection, L2 norms, logits, softmax.
    @pl.when(k == pl.num_programs(0) - 1)
    def _():
        img = acc_ref[...]                                        # (Bp, D) f32
        txt = jnp.dot(txt_ref[...], wtxt_ref[...],
                      preferred_element_type=jnp.float32)         # (Tp, D) f32

        # x / ||x|| via rsqrt (EUP). eps only guards padded all-zero rows.
        img_n = img * lax.rsqrt(
            jnp.sum(img * img, axis=-1, keepdims=True) + 1e-12)
        txt_n = txt * lax.rsqrt(
            jnp.sum(txt * txt, axis=-1, keepdims=True) + 1e-12)

        # 100 * img_n @ txt_n.T — contract on the last dims directly so the
        # (Tp, D) text matrix is consumed in its natural layout (no XLU
        # transpose materialized).
        logits = 100.0 * lax.dot_general(
            img_n, txt_n, (((1,), (1,)), ((), ())),
            preferred_element_type=jnp.float32)                   # (Bp, Tp)

        # Mask padded class columns out of the softmax.
        col = lax.broadcasted_iota(jnp.int32, logits.shape, 1)
        logits = jnp.where(col < n_text, logits, -1e30)

        m = jnp.max(logits, axis=-1, keepdims=True)
        e = jnp.exp(logits - m)
        denom = jnp.sum(e, axis=-1, keepdims=True)
        probs = e * pl.reciprocal(denom, approx=True)             # EUP recip
        o_ref[...] = probs.astype(o_ref.dtype)


def fused_clip_probs(x_flat, w_img, txt_pooled, w_txt, *, n_text, tk):
    """x_flat: (Bp, Kp) bf16, w_img: (Kp, D) bf16,
    txt_pooled: (Tp, E) f32, w_txt: (E, D) f32 -> probs (Bp, Tp) f32."""
    b_pad, k_pad = x_flat.shape
    _, d = w_img.shape
    t_pad, e = txt_pooled.shape
    assert k_pad % tk == 0
    n_k = k_pad // tk

    kernel = functools.partial(_fused_prompter_kernel, n_text=n_text)
    return pl.pallas_call(
        kernel,
        out_shape=jax.ShapeDtypeStruct((b_pad, t_pad), jnp.float32),
        grid_spec=pltpu.PrefetchScalarGridSpec(
            num_scalar_prefetch=0,
            grid=(n_k,),
            in_specs=[
                pl.BlockSpec((b_pad, tk), lambda k: (0, k)),   # image acts
                pl.BlockSpec((tk, d), lambda k: (k, 0)),       # image weights
                pl.BlockSpec((t_pad, e), lambda k: (0, 0)),    # pooled text
                pl.BlockSpec((e, d), lambda k: (0, 0)),        # text proj
            ],
            out_specs=pl.BlockSpec((b_pad, t_pad), lambda k: (0, 0)),
            scratch_shapes=[pltpu.VMEM((b_pad, d), jnp.float32)],
        ),
        compiler_params=pltpu.CompilerParams(
            # K is a reduction axis; output block is resident across it.
            dimension_semantics=("arbitrary",),
            # Explicit VMEM budget (safe on v7x's 64 MiB as well as v5e/v6e).
            vmem_limit_bytes=32 << 20,
        ),
    )(x_flat, w_img, txt_pooled, w_txt)


# ---------------------------------------------------------------------------
# VisualPrompter (synthetic CLIP encoders + fused Pallas hot path)
# ---------------------------------------------------------------------------

class VisualPrompterJAX:
    def __init__(self, pad_h, pad_w, img_size, embed_dim, vocab_size,
                 tok_embed_dim, key, *, k_tile=512):
        C, H, W = 3, img_size, img_size
        # Mirror reference __init__ (unused in forward, kept for parity).
        mask = jnp.ones((C, H, W), jnp.float32)
        mask = mask.at[:, pad_h:H - pad_h, pad_w:W - pad_w].set(0.0)
        self.mask = mask
        self.perturbation = jnp.zeros((C, H, W), jnp.float32)

        k_img, k_tok, k_txt = jax.random.split(key, 3)
        K = C * H * W
        self.k_tile = k_tile                      # bump on v5e/v6e (128 MiB VMEM)
        self.k_pad = _round_up(K, k_tile)
        self.k_raw = K
        self.embed_dim = embed_dim

        # Synthetic "CLIP" parameters (deterministic).  Image-encoder weight is
        # stored pre-padded along K and in bf16 (HBM-bandwidth bound path).
        w_img = jax.random.normal(k_img, (K, embed_dim), jnp.float32) * 0.02
        w_img = jnp.pad(w_img, ((0, self.k_pad - K), (0, 0)))
        self.w_img = w_img.astype(jnp.bfloat16)
        self.tok_embed = (jax.random.normal(k_tok, (vocab_size, tok_embed_dim),
                                            jnp.float32) * 0.02)
        self.w_txt = (jax.random.normal(k_txt, (tok_embed_dim, embed_dim),
                                        jnp.float32) * 0.02)

    def forward(self, images, text_inputs):
        B = images.shape[0]
        T = text_inputs.shape[0]
        b_pad = _round_up(B, 8)       # sublane alignment
        t_pad = _round_up(T, 128)     # lane-dense output (no masked stores)

        # Image glue: NCHW -> (B, K) flatten, bf16, pad B and K.
        x = images.reshape(B, -1).astype(jnp.bfloat16)
        x = jnp.pad(x, ((0, b_pad - B), (0, self.k_pad - self.k_raw)))

        # Text glue: embedding gather + mean pool (plain JAX), pad T.
        # TODO(synk): embedding gather/mean-pool stays in XLA; no clean Pallas
        # gather win at this tiny prompt size.
        emb = jnp.take(self.tok_embed, text_inputs, axis=0)      # (T, L, E)
        pooled = jnp.mean(emb, axis=1)                           # (T, E)
        pooled = jnp.pad(pooled, ((0, t_pad - T), (0, 0)))       # (Tp, E)

        probs = fused_clip_probs(x, self.w_img, pooled, self.w_txt,
                                 n_text=T, tk=self.k_tile)       # (Bp, Tp)
        return probs[:B, :T]


# ---------------------------------------------------------------------------
# Main
# ---------------------------------------------------------------------------

if __name__ == "__main__":
    key = jax.random.PRNGKey(0)
    k_params, k_img, k_txt = jax.random.split(key, 3)

    B = 2            # batch of images
    IMG = 32         # small spatial size (stand-in for 224)
    T = 5            # number of text prompts (classes)
    L = 8            # tokens per prompt
    D = 128          # CLIP embed dim (lane-aligned)
    VOCAB = 50
    TOK_E = 32

    prompter = VisualPrompterJAX(pad_h=4, pad_w=4, img_size=IMG,
                                 embed_dim=D, vocab_size=VOCAB,
                                 tok_embed_dim=TOK_E, key=k_params,
                                 k_tile=512)

    images = jax.random.normal(k_img, (B, 3, IMG, IMG), jnp.float32)
    text_inputs = jax.random.randint(k_txt, (T, L), 0, VOCAB, jnp.int32)

    probs = prompter.forward(images, text_inputs)
    probs = jax.block_until_ready(probs)

    # Sanity: shape, finiteness, softmax rows ~sum to 1 (approx reciprocal on
    # the EUP, hence the relaxed tolerance).
    assert probs.shape == (B, T)
    assert bool(jnp.all(jnp.isfinite(probs)))
    row_sums = jnp.sum(probs, axis=-1)
    assert bool(jnp.allclose(row_sums, 1.0, atol=1e-2))

    print("KERNEL_OK")
</pallas_src>

<mosaic_0001>
module attributes {stable_mosaic.version = 11 : i64} {
  func.func @_fused_prompter_kernel(%arg0: i32, %arg1: memref<8x512xbf16, #tpu.memory_space<vmem>>, %arg2: memref<512x128xbf16, #tpu.memory_space<vmem>>, %arg3: memref<128x32xf32, #tpu.memory_space<vmem>>, %arg4: memref<32x128xf32, #tpu.memory_space<vmem>>, %arg5: memref<8x128xf32, #tpu.memory_space<vmem>>, %arg6: memref<8x128xf32, #tpu.memory_space<vmem>>) attributes {dimension_semantics = [#tpu.dimension_semantics<arbitrary>], iteration_bounds = array<i64: 6>, scalar_prefetch = 0 : i64, scratch_operands = 1 : i64, tpu.core_type = #tpu.core_type<tc>, window_params = [{transform_indices = @transform_0, window_bounds = array<i64: 8, 512>}, {transform_indices = @transform_1, window_bounds = array<i64: 512, 128>}, {pipeline_mode = #tpu.pipeline_mode<synchronous>, transform_indices = @transform_2, window_bounds = array<i64: 128, 32>}, {pipeline_mode = #tpu.pipeline_mode<synchronous>, transform_indices = @transform_3, window_bounds = array<i64: 32, 128>}, {pipeline_mode = #tpu.pipeline_mode<synchronous>, transform_indices = @transform_4, window_bounds = array<i64: 8, 128>}]} {
    %c0_i32 = arith.constant 0 : i32
    %0 = arith.cmpi eq, %arg0, %c0_i32 : i32
    %1 = arith.extui %0 : i1 to i32
    %c0_i32_0 = arith.constant 0 : i32
    %2 = arith.cmpi ne, %1, %c0_i32_0 : i32
    scf.if %2 {
      %cst_9 = arith.constant 0.000000e+00 : f32
      %12 = vector.broadcast %cst_9 : f32 to vector<8x128xf32>
      %c0_10 = arith.constant 0 : index
      %c0_11 = arith.constant 0 : index
      %13 = vector.load %arg6[%c0_10, %c0_11] : memref<8x128xf32, #tpu.memory_space<vmem>>, vector<8x128xf32>
      tpu.vector_store %arg6[%c0_10, %c0_11], %12 {strides = array<i32>} : memref<8x128xf32, #tpu.memory_space<vmem>>, vector<8x128xf32>,
    } else {
    }
    %c0 = arith.constant 0 : index
    %c0_1 = arith.constant 0 : index
    %3 = vector.load %arg6[%c0, %c0_1] : memref<8x128xf32, #tpu.memory_space<vmem>>, vector<8x128xf32>
    %c0_2 = arith.constant 0 : index
    %c0_3 = arith.constant 0 : index
    %4 = vector.load %arg1[%c0_2, %c0_3] : memref<8x512xbf16, #tpu.memory_space<vmem>>, vector<8x512xbf16>
    %c0_4 = arith.constant 0 : index
    %c0_5 = arith.constant 0 : index
    %5 = vector.load %arg2[%c0_4, %c0_5] : memref<512x128xbf16, #tpu.memory_space<vmem>>, vector<512x128xbf16>
    %cst = arith.constant dense<0.000000e+00> : vector<8x128xf32>
    %6 = tpu.matmul %4, %5, %cst {dimension_numbers = #tpu.dot_dimension_numbers<[1], [0], [0], [1], [0, 0, 1, 1], [], []>} : vector<8x512xbf16>, vector<512x128xbf16>, vector<8x128xf32> -> vector<8x128xf32>
    %7 = arith.addf %3, %6 : vector<8x128xf32>
    %c0_6 = arith.constant 0 : index
    %c0_7 = arith.constant 0 : index
    %8 = vector.load %arg6[%c0_6, %c0_7] : memref<8x128xf32, #tpu.memory_space<vmem>>, vector<8x128xf32>
    tpu.vector_store %arg6[%c0_6, %c0_7], %7 {strides = array<i32>} : memref<8x128xf32, #tpu.memory_space<vmem>>, vector<8x128xf32>,
    %c5_i32 = arith.constant 5 : i32
    %9 = arith.cmpi eq, %arg0, %c5_i32 : i32
    %10 = arith.extui %9 : i1 to i32
    %c0_i32_8 = arith.constant 0 : i32
    %11 = arith.cmpi ne, %10, %c0_i32_8 : i32
    scf.if %11 {
      %c0_9 = arith.constant 0 : index
      %c0_10 = arith.constant 0 : index
      %12 = vector.load %arg6[%c0_9, %c0_10] : memref<8x128xf32, #tpu.memory_space<vmem>>, vector<8x128xf32>
      %c0_11 = arith.constant 0 : index
      %c0_12 = arith.constant 0 : index
      %13 = vector.load %arg3[%c0_11, %c0_12] : memref<128x32xf32, #tpu.memory_space<vmem>>, vector<128x32xf32>
      %c0_13 = arith.constant 0 : index
      %c0_14 = arith.constant 0 : index
      %14 = vector.load %arg4[%c0_13, %c0_14] : memref<32x128xf32, #tpu.memory_space<vmem>>, vector<32x128xf32>
      %cst_15 = arith.constant dense<0.000000e+00> : vector<128x128xf32>
      %15 = tpu.matmul %13, %14, %cst_15 {dimension_numbers = #tpu.dot_dimension_numbers<[1], [0], [0], [1], [0, 0, 1, 1], [], []>} : vector<128x32xf32>, vector<32x128xf32>, vector<128x128xf32> -> vector<128x128xf32>
      %16 = arith.mulf %12, %12 : vector<8x128xf32>
      %cst_16 = arith.constant dense<0.000000e+00> : vector<8xf32>
      %17 = vector.multi_reduction <add>, %16, %cst_16 [1] : vector<8x128xf32> to vector<8xf32>
      %18 = vector.shape_cast %17 : vector<8xf32> to vector<8x1xf32>
      %cst_17 = arith.constant 9.99999996E-13 : f32
      %19 = vector.broadcast %cst_17 : f32 to vector<8x1xf32>
      %20 = arith.addf %18, %19 : vector<8x1xf32>
      %21 = math.rsqrt %20 : vector<8x1xf32>
      %22 = vector.broadcast %21 : vector<8x1xf32> to vector<8x128xf32>
      %23 = arith.mulf %12, %22 : vector<8x128xf32>
      %24 = arith.mulf %15, %15 : vector<128x128xf32>
      %cst_18 = arith.constant dense<0.000000e+00> : vector<128xf32>
      %25 = vector.multi_reduction <add>, %24, %cst_18 [1] : vector<128x128xf32> to vector<128xf32>
      %26 = vector.shape_cast %25 : vector<128xf32> to vector<128x1xf32>
      %cst_19 = arith.constant 9.99999996E-13 : f32
      %27 = vector.broadcast %cst_19 : f32 to vector<128x1xf32>
      %28 = arith.addf %26, %27 : vector<128x1xf32>
      %29 = math.rsqrt %28 : vector<128x1xf32>
      %30 = vector.broadcast %29 : vector<128x1xf32> to vector<128x128xf32>
      %31 = arith.mulf %15, %30 : vector<128x128xf32>
      %cst_20 = arith.constant dense<0.000000e+00> : vector<8x128xf32>
      %32 = tpu.matmul %23, %31, %cst_20 {dimension_numbers = #tpu.dot_dimension_numbers<[1], [1], [0], [0], [0, 0, 1, 0], [], []>} : vector<8x128xf32>, vector<128x128xf32>, vector<8x128xf32> -> vector<8x128xf32>
      %cst_21 = arith.constant 1.000000e+02 : f32
      %33 = vector.broadcast %cst_21 : f32 to vector<8x128xf32>
      %34 = arith.mulf %33, %32 : vector<8x128xf32>
      %35 = tpu.iota {dimensions = array<i32: 1>} : vector<8x128xi32>
      %c5_i32_22 = arith.constant 5 : i32
      %36 = vector.broadcast %c5_i32_22 : i32 to vector<8x128xi32>
      %37 = arith.cmpi slt, %35, %36 : vector<8x128xi32>
      %cst_23 = arith.constant -1.000000e+30 : f32
      %38 = vector.broadcast %cst_23 : f32 to vector<8x128xf32>
      %39 = arith.select %37, %34, %38 : vector<8x128xi1>, vector<8x128xf32>
      %cst_24 = arith.constant dense<0xFF800000> : vector<8xf32>
      %40 = vector.multi_reduction <maximumf>, %39, %cst_24 [1] : vector<8x128xf32> to vector<8xf32>
      %41 = vector.shape_cast %40 : vector<8xf32> to vector<8x1xf32>
      %42 = vector.broadcast %41 : vector<8x1xf32> to vector<8x128xf32>
      %43 = arith.subf %39, %42 : vector<8x128xf32>
      %44 = math.exp %43 : vector<8x128xf32>
      %cst_25 = arith.constant dense<0.000000e+00> : vector<8xf32>
      %45 = vector.multi_reduction <add>, %44, %cst_25 [1] : vector<8x128xf32> to vector<8xf32>
      %46 = vector.shape_cast %45 : vector<8xf32> to vector<8x1xf32>
      %47 = tpu.reciprocal %46 {approx = true} : vector<8x1xf32> -> vector<8x1xf32>
      %48 = vector.broadcast %47 : vector<8x1xf32> to vector<8x128xf32>
      %49 = arith.mulf %44, %48 : vector<8x128xf32>
      %c0_26 = arith.constant 0 : index
      %c0_27 = arith.constant 0 : index
      %50 = vector.load %arg5[%c0_26, %c0_27] : memref<8x128xf32, #tpu.memory_space<vmem>>, vector<8x128xf32>
      tpu.vector_store %arg5[%c0_26, %c0_27], %49 {strides = array<i32>} : memref<8x128xf32, #tpu.memory_space<vmem>>, vector<8x128xf32>,
    } else {
    }
    return
  }
  func.func @transform_0(%arg0: i32) -> (i32, i32) {
    %c0_i32 = arith.constant 0 : i32
    %c0_i32_0 = arith.constant 0 : i32
    return %c0_i32, %arg0 : i32, i32
  }
  func.func @transform_1(%arg0: i32) -> (i32, i32) {
    %c0_i32 = arith.constant 0 : i32
    %c0_i32_0 = arith.constant 0 : i32
    return %arg0, %c0_i32 : i32, i32
  }
  func.func @transform_2(%arg0: i32) -> (i32, i32) {
    %c0_i32 = arith.constant 0 : i32
    %c0_i32_0 = arith.constant 0 : i32
    %c0_i32_1 = arith.constant 0 : i32
    return %c0_i32, %c0_i32_0 : i32, i32
  }
  func.func @transform_3(%arg0: i32) -> (i32, i32) {
    %c0_i32 = arith.constant 0 : i32
    %c0_i32_0 = arith.constant 0 : i32
    %c0_i32_1 = arith.constant 0 : i32
    return %c0_i32, %c0_i32_0 : i32, i32
  }
  func.func @transform_4(%arg0: i32) -> (i32, i32) {
    %c0_i32 = arith.constant 0 : i32
    %c0_i32_0 = arith.constant 0 : i32
    %c0_i32_1 = arith.constant 0 : i32
    return %c0_i32, %c0_i32_0 : i32, i32
  }
}

</mosaic_0001>

<bundles_post_ra>
// kernel: tpu_custom_call.1
= control target key start
LH: loop header
LB: loop body
LE: loop exit
PB: predicated region body
PF: predicated region fallthrough
CT: control target
= control target key end

     0   :  { %9 = vsyncpa [#allocation4], 0  ;;  %s1906_s0 = inlined_call_operand.vmem [shape: bf16[8,3072], index: 0, kind: input, shape index: {}]   ;;  %s1907_s1 = inlined_call_operand.hbm [shape: bf16[3072,128], index: 1, kind: input, shape index: {}]   ;;  %s1908_s2 = inlined_call_operand.vmem [shape: f32[128,32], index: 2, kind: input, shape index: {}]   ;;  %s1909_s3 = inlined_call_operand.vmem [shape: f32[32,128], index: 3, kind: input, shape index: {}]   ;;  %s1910_s4 = inlined_call_operand.hbm [shape: f32[8,128], index: 4, kind: output, shape index: {}]  }
   0x1   :  { %11 = vsyncpa [#allocation4 + $0x1], 0 }
   0x2   :  { %12 = vsyncpa [#allocation5], 0  ;;  %s1567_s15 = smov 0   ;;  %s1569_s16 = smov 0  }
   0x3   :  { %s1571_s17 = smov 0   ;;  %s1573_s18 = smov 0  }
   0x4 LB: > { %s1586_s19 = sadd.s32 4294967295, %s1532_s18   ;;  %s1589_s20 = sadd.s32 1, %s1532_s18   ;;  %s1532_s18 = sphi %s1573_s18, %s1917_s18   ;;  %s1528_s17 = sphi %s1571_s17, %s1916_s17   ;;  %s1524_s16 = sphi %s1569_s16, %s1915_s16   ;;  %s1520_s15 = sphi %s1567_s15, %s1914_s15  }
   0x5   : > { %s48_s21 = ssub.s32 %s1532_s18, %s1589_s20  ;;  %s51_s22 = sadd.s32 1, %s1528_s17 }
   0x6   : > { %p49_p0 = scmp.eq.s32.totalorder %s48_s21, 0  ;;  %p58_p1 = scmp.ne.s32.totalorder %s1528_s17, %s1524_s16 }
   0x7   : > { %p59_p2 = scmp.eq.s32.totalorder %s1532_s18, 0  ;;  %p64_p3 = scmp.ne.s32.totalorder %s1524_s16, %s1520_s15 }
   0x8   : > { %s1599_s23 = scalar_select %p49_p0, %s1528_s17, %s51_s22  }
   0x9   : > { %p60_p4 = por %p59_p2, %p58_p1  ;;  %p65_p5 = scmp.eq.s32.totalorder %s1586_s19, 0 }
   0xa   : > { %p1322_p6 = scmp.lt.s32.totalorder %s1532_s18, 6  ;;  %s166_s25 = sand.u32 1, %s1528_s17  }
   0xb   : > { %p1603_p7 = por %p65_p5, %p64_p3  ;;  %s1066_s26 = sshll.u32 %s166_s25, 8 }
   0xc   : > { %s1131_s27 = sshll.u32 %s1532_s18, 12  ;;  %s170_s5 = scalar_lea.vmem [#allocation3], %s1066_s26 }
   0xd   : > { %s1612_s30 = scalar_lea.hbm %s1907_s1, %s1131_s27  ;;  %s177_s6 = sshll.u32 %s170_s5, 4  ;;  %s1614_s6 = int_to_ptr.vmem [resolvable:$true] %s177_s6 }
   0xe   : > { %p1616_p8 = pnand %p1322_p6, %p60_p4  ;;  %s1621_s8 = scalar_lea.sflag [#allocation4], %s166_s25 }
   0xf   : > { %s1438_s9 = scalar_lea.hbm %s1612_s30, 4096  ;;  %s1443_s12 = scalar_lea.hbm %s1907_s1, 24576 }
  0x10   : > { %p1439_p10 = scmp.ne.s32.totalorder %s1612_s30, %s1438_s9  ;;  %p1440_p11 = pneg %p1616_p8 }
  0x11   : > { %p1444_p0 = scmp.lt.u32.totalorder %s1612_s30, %s1907_s1  ;;  %p1445_p1 = scmp.lt.u32.totalorder %s1443_s12, %s1438_s9 }
  0x12   : > { %p1441_p12 = pnand %p1440_p11, %p1439_p10  ;;  %p1447_p3 = scmp.lt.u32.totalorder %s1438_s9, %s1612_s30 }
  0x13   : > { %p1446_p2 = por %p1445_p1, %p1444_p0 }
  0x14   : > { %p1442_p13 = pneg %p1441_p12 }
  0x15   : > { %p1448_p4 = por %p1447_p3, %p1446_p2 }
  0x17   : > { %p1449_p5 = pnand %p1448_p4, %p1442_p13 }
  0x19   : > { %1452 = shalt.err (!%p1449_p5)
}
  0x1a   : > { %s1453_s15 = scalar_lea.vmem %s1614_s6, 4096  ;;  %s1534_s21 = smov [#allocation3]  }
  0x1b   : > { %p1454_p6 = scmp.ne.s32.totalorder %s1614_s6, %s1453_s15  ;;  %s1458_s22 = sshll.u32 %s1534_s21, 4  ;;  %s1459_s22 = int_to_ptr.vmem [resolvable:$false] %s1458_s22 }
  0x1c   : > { %s1460_s25 = scalar_lea.vmem %s1459_s22, 8192  ;;  %p1461_p9 = scmp.lt.s32.totalorder %s1614_s6, %s1459_s22 }
  0x1d   : > { %p1456_p10 = pnand %p1454_p6, %p1440_p11  ;;  %p1462_p0 = scmp.lt.s32.totalorder %s1460_s25, %s1453_s15 }
  0x1f   : > { %p1457_p12 = pneg %p1456_p10  ;;  %p1463_p1 = por %p1462_p0, %p1461_p9 }
  0x21   : > { %p1464_p2 = pnand %p1463_p1, %p1457_p12 }
  0x23   : > { %1467 = shalt.err (!%p1464_p2)
}
  0x24   : > { %s1535_s26 = smov 64   ;;  %s1536_s27 = smov 4  }
  0x25   : > { %1321 = dma.hbm_to_vmem [thread:$0]  (!%p1616_p8), %s1612_s30, 4096, %s1614_s6, %s1621_s8, %s1535_s26, %s1535_s26, %s1536_s27  }
  0x26   : > { %p185_p11 = scmp.lt.s32.totalorder %s1532_s18, 7  ;;  %p1913_p13 = scmp.ge.s32.totalorder %s1532_s18, 1 }
  0x28   : > { %p186_p3 = pnand %p1913_p13, %p185_p11 }
  0x29   : > { %s191_s28 = sand.u32 (!%p186_p3), 1, %s1524_s16  }
  0x2a   : > { %189 = sbr.rel (%p186_p3) target bundleno = 1299 (0x513), region = 36  ;;  %s1070_s29 = sshll.u32 (!%p186_p3), %s191_s28, 8 }
  0x2b   : > { %s192_s5 = scalar_lea.sflag (!%p186_p3), [#allocation4], %s191_s28  ;;  %s1653_s9 = scalar_lea.vmem (!%p186_p3), [#allocation3], %s1070_s29 }
  0x31   : > { %1511 = dma.done.wait (%p1603_p7), %s192_s5, 4096  }
  0x32   : > { %1513 = vsyncadd (%p1603_p7), %s192_s5, 4294963200  ;;  %s1071_s10 = sshll.u32 %s1586_s19, 2  ;;  %p1073_p8 = scmp.ne.s32.totalorder %s1586_s19, 0 }
  0x33   : > { %p221_p9 = scmp.lt.s32.totalorder %s1071_s10, 23  ;;  %v1537_v0 = vmov (!%p1073_p8), 0.0  }
  0x34   : > { %231 = sbr.rel (%p1073_p8) target bundleno = 59 (0x3b), region = 44  ;;  %232 = vst [vmem:[#allocation2] sm:$0xff] (!%p1073_p8), %v1537_v0 }
  0x35   : > { %s1919_s10 = smov (!%p221_p9, %s1071_s10), 23 }
  0x36   : > { %s1072_s30 = sshll.u32 %s1919_s10, 2 }
  0x37   : > { %s1663_s7 = scalar_lea.vmem %s1906_s0, %s1072_s30 }
  0x3b PF: > { %v1364_v1 = vld [vmem:[%s1653_s9 + $0x40] sm:$0xff]   ;;  %v1368_v5 = vld [vmem:[%s1653_s9 + $0x48] sm:$0xff]   ;;  %v1372_v9 = vld [vmem:[%s1653_s9 + $0x50] sm:$0xff]   ;;  %p1110_p7 = scmp.ne.s32.totalorder %s1586_s19, 5 }
  0x3c   : > { %v1365_v2 = vld [vmem:[%s1653_s9 + $0xc0] sm:$0xff]   ;;  %1132 = vmatprep.subr.bf16.mxu0 %v1364_v1  ;;  %v1369_v6 = vld [vmem:[%s1653_s9 + $0xc8] sm:$0xff]   ;;  %v1373_v10 = vld [vmem:[%s1653_s9 + $0xd0] sm:$0xff]   ;;  %vm613_vm0 = vcmask (!%p1110_p7), 261120   ;;  %vm1539_vm1 = vmmov (!%p1110_p7), 0  }
  0x3d   : > { %v1366_v3 = vld [vmem:[%s1653_s9] sm:$0xff]   ;;  %1154 = vmatprep.subr.bf16.mxu1 %v1365_v2  ;;  %v1370_v7 = vld [vmem:[%s1653_s9 + $0x8] sm:$0xff]   ;;  %v1374_v11 = vld [vmem:[%s1653_s9 + $0x10] sm:$0xff]  }
  0x3e   : > { %v1367_v4 = vld [vmem:[%s1653_s9 + $0x80] sm:$0xff]   ;;  %1133 = vmatpush3.bf16.msra.mxu0 %v1366_v3  ;;  %v1371_v8 = vld [vmem:[%s1653_s9 + $0x88] sm:$0xff]   ;;  %v1375_v12 = vld [vmem:[%s1653_s9 + $0x90] sm:$0xff]  }
  0x3f   : > { %1155 = vmatpush3.bf16.msra.mxu1 %v1367_v4  ;;  %1134 = vmatprep.subr.bf16.mxu0 %v1368_v5  ;;  %v1376_v13 = vld [vmem:[%s1653_s9 + $0x58] sm:$0xff]   ;;  %v1380_v17 = vld [vmem:[%s1653_s9 + $0x60] sm:$0xff]   ;;  %v1384_v21 = vld [vmem:[%s1653_s9 + $0x68] sm:$0xff]  }
  0x40   : > { %1156 = vmatprep.subr.bf16.mxu1 %v1369_v6  ;;  %v1377_v14 = vld [vmem:[%s1653_s9 + $0xd8] sm:$0xff]   ;;  %v1381_v18 = vld [vmem:[%s1653_s9 + $0xe0] sm:$0xff]   ;;  %v1385_v22 = vld [vmem:[%s1653_s9 + $0xe8] sm:$0xff]  }
  0x41   : > { %v1378_v15 = vld [vmem:[%s1653_s9 + $0x18] sm:$0xff]   ;;  %v1382_v19 = vld [vmem:[%s1653_s9 + $0x20] sm:$0xff]   ;;  %v1386_v23 = vld [vmem:[%s1653_s9 + $0x28] sm:$0xff]  }
  0x42   : > { %1135 = vmatpush3.bf16.msra.mxu0 %v1370_v7  ;;  %v1379_v16 = vld [vmem:[%s1653_s9 + $0x98] sm:$0xff]   ;;  %v1383_v20 = vld [vmem:[%s1653_s9 + $0xa0] sm:$0xff]   ;;  %v1387_v24 = vld [vmem:[%s1653_s9 + $0xa8] sm:$0xff]  }
  0x43   : > { %1157 = vmatpush3.bf16.msra.mxu1 %v1371_v8  ;;  %1136 = vmatprep.subr.bf16.mxu0 %v1372_v9  ;;  %v1388_v25 = vld [vmem:[%s1653_s9 + $0x70] sm:$0xff]   ;;  %v1392_v29 = vld [vmem:[%s1653_s9 + $0x78] sm:$0xff]   ;;  %v235_v34 = vld [vmem:[%s1663_s7 + $0x8] sm:$0xff] }
  0x44   : > { %1158 = vmatprep.subr.bf16.mxu1 %v1373_v10  ;;  %v1389_v26 = vld [vmem:[%s1653_s9 + $0xf0] sm:$0xff]   ;;  %v1393_v30 = vld [vmem:[%s1653_s9 + $0xf8] sm:$0xff]   ;;  %v1076_v37 = vcombine.low %v235_v34, %v235_v34  ;;  %v1077_v38 = vcombine.high %v235_v34, %v235_v34  ;;  %v610_v53 = vld [vmem:[%s1909_s3 + $0x8] sm:$0xff] (!%p1110_p7) }
  0x45   : > { %v1390_v27 = vld [vmem:[%s1653_s9 + $0x30] sm:$0xff]   ;;  %v1394_v31 = vld [vmem:[%s1653_s9 + $0x38] sm:$0xff]   ;;  %v611_v54 = vld [vmem:[%s1909_s3 + $0x10] sm:$0xff] (!%p1110_p7) }
  0x46   : > { %1137 = vmatpush3.bf16.msra.mxu0 %v1374_v11  ;;  %v1391_v28 = vld [vmem:[%s1653_s9 + $0xb0] sm:$0xff]   ;;  %v1395_v32 = vld [vmem:[%s1653_s9 + $0xb8] sm:$0xff]   ;;  %578 = vmatprep.mubr.bf16.mxu1 %v1077_v38  ;;  %v594_v59 = vld [vmem:[%s1908_s2 + $0x8] sm:$0xff] (!%p1110_p7) }
  0x47   : > { %1159 = vmatpush3.bf16.msra.mxu1 %v1375_v12  ;;  %1138 = vmatprep.subr.bf16.mxu0 %v1376_v13  ;;  %v234_v33 = vld [vmem:[%s1663_s7] sm:$0xff]  ;;  %v612_v56 = vld [vmem:[%s1909_s3 + $0x18] sm:$0xff] (!%p1110_p7)  ;;  %v595_v60 = vld [vmem:[%s1908_s2 + $0x10] sm:$0xff] (!%p1110_p7) }
  0x48   : > { %1160 = vmatprep.subr.bf16.mxu1 %v1377_v14  ;;  %v1074_v35 = vcombine.low %v234_v33, %v234_v33  ;;  %v1075_v36 = vcombine.high %v234_v33, %v234_v33  ;;  %v233_v47 = vld [vmem:[#allocation2] sm:$0xff]  ;;  %v1284_v58 = vpack.c.bf16 (!%p1110_p7), %v612_v56, %v611_v54  ;;  %v596_v61 = vld [vmem:[%s1908_s2 + $0x18] sm:$0xff] (!%p1110_p7)  ;;  %v598_v63 = vld [vmem:[%s1908_s2 + $0x28] sm:$0xff] (!%p1110_p7) }
  0x49   : > { %v609_v52 = vld [vmem:[%s1909_s3] sm:$0xff] (!%p1110_p7)  ;;  %v599_v0 = vld [vmem:[%s1908_s2 + $0x30] sm:$0xff] (!%p1110_p7)  ;;  %v600_v1 = vld [vmem:[%s1908_s2 + $0x38] sm:$0xff] (!%p1110_p7) }
  0x4a   : > { %1139 = vmatpush3.bf16.msra.mxu0 %v1378_v15  ;;  %538 = vmatprep.mubr.bf16.mxu0 %v1075_v36  ;;  %v1280_v55 = vpack.c.bf16 (!%p1110_p7), %v610_v53, %v609_v52  ;;  %v593_v57 = vld [vmem:[%s1908_s2] sm:$0xff] (!%p1110_p7)  ;;  %v602_v3 = vld [vmem:[%s1908_s2 + $0x48] sm:$0xff] (!%p1110_p7)  ;;  %v603_v4 = vld [vmem:[%s1908_s2 + $0x50] sm:$0xff] (!%p1110_p7) }
  0x4b   : > { %1161 = vmatpush3.bf16.msra.mxu1 %v1379_v16  ;;  %1140 = vmatprep.subr.bf16.mxu0 %v1380_v17  ;;  %v597_v62 = vld [vmem:[%s1908_s2 + $0x20] sm:$0xff] (!%p1110_p7)  ;;  %v604_v5 = vld [vmem:[%s1908_s2 + $0x58] sm:$0xff] (!%p1110_p7)  ;;  %v606_v7 = vld [vmem:[%s1908_s2 + $0x68] sm:$0xff] (!%p1110_p7) }
  0x4c   : > { %1162 = vmatprep.subr.bf16.mxu1 %v1381_v18  ;;  %v601_v2 = vld [vmem:[%s1908_s2 + $0x40] sm:$0xff] (!%p1110_p7)  ;;  %v607_v8 = vld [vmem:[%s1908_s2 + $0x70] sm:$0xff] (!%p1110_p7)  ;;  %v608_v9 = vld [vmem:[%s1908_s2 + $0x78] sm:$0xff] (!%p1110_p7) }
  0x4d   : > { %v605_v6 = vld [vmem:[%s1908_s2 + $0x60] sm:$0xff] (!%p1110_p7) }
  0x4e   : > { %1141 = vmatpush3.bf16.msra.mxu0 %v1382_v19 }
  0x4f   : > { %1163 = vmatpush3.bf16.msra.mxu1 %v1383_v20  ;;  %1142 = vmatprep.subr.bf16.mxu0 %v1384_v21 }
  0x50   : > { %1164 = vmatprep.subr.bf16.mxu1 %v1385_v22 }
  0x52   : > { %1143 = vmatpush3.bf16.msra.mxu0 %v1386_v23 }
  0x53   : > { %1165 = vmatpush3.bf16.msra.mxu1 %v1387_v24  ;;  %1144 = vmatprep.subr.bf16.mxu0 %v1388_v25 }
  0x54   : > { %1166 = vmatprep.subr.bf16.mxu1 %v1389_v26 }
  0x56   : > { %1145 = vmatpush3.bf16.msra.mxu0 %v1390_v27 }
  0x57   : > { %1167 = vmatpush3.bf16.msra.mxu1 %v1391_v28  ;;  %1146 = vmatprep.subr.bf16.mxu0 %v1392_v29 }
  0x58   : > { %1168 = vmatprep.subr.bf16.mxu1 %v1393_v30 }
  0x5a   : > { %1147 = vmatpush3.bf16.msra.mxu0 %v1394_v31 }
  0x5b   : > { %1169 = vmatpush3.bf16.msra.mxu1 %v1395_v32  ;;  %1281 = vmatprep.subr.bf16.mxu0 (!%p1110_p7), %v1280_v55 }
  0x5d   : > { %539 = vmatmul.mubr.bf16.vlgmr.msra.gmra.mrb[0].mxu0 %v1074_v35 }
  0x5e   : > { %579 = vmatmul.mubr.bf16.vlgmr.msra.gmra.mrb[0].mxu1 %v1076_v37  ;;  %1221 = vmatprep.mubr.msk.f32.mxu0 (!%p1110_p7), %vm613_vm0, %v593_v57 }
  0x5f   : > { %1283 = vmatpush3.bf16.msra.mxu0 (!%p1110_p7), %v1280_v55 }
  0x60   : > { %1285 = vmatprep.subr.bf16.mxu0 (!%p1110_p7), %v1284_v58 }
  0x63   : > { %1287 = vmatpush3.bf16.msra.mxu0 (!%p1110_p7), %v1284_v58 }
 0x130   : > { %v1148_v39 = vpop.f32.mrb[0].mxu0 }
 0x131   : > { %v1170_v40 = vpop.f32.mrb[0].mxu1  ;;  %v1149_v41 = vpop.f32.mrb[1].mxu0  ;;  %1222 = vmatmul.mubr.msk.f32.vlgmr.msra.gmra.mrb[0].mxu0 (!%p1110_p7), %vm613_vm0, %v594_v59 }
 0x132   : > { %v1171_v42 = vpop.f32.mrb[1].mxu1  ;;  %v1150_v43 = vadd.f32 %v1149_v41, %v1148_v39  ;;  %v1151_v45 = vpop.f32.mrb[2].mxu0  ;;  %1224 = vmatprep.mubr.msk.f32.mxu0 (!%p1110_p7), %vm613_vm0, %v595_v60 }
 0x133   : > { %v1172_v44 = vadd.f32 %v1171_v42, %v1170_v40  ;;  %v1173_v46 = vpop.f32.mrb[2].mxu1  ;;  %v1152_v48 = vpop.f32.mrb[3].mxu0  ;;  %591 = sbr.rel (%p1110_p7) target bundleno = 1274 (0x4fa), region = 48  ;;  %v1540_v45 = vmov (!%p1110_p7), 0.0  }
 0x134   : > { %v1174_v49 = vpop.f32.mrb[3].mxu1  ;;  %1277 = vmatprep.mubr.msk.f32.mxu1 (!%p1110_p7), %vm1539_vm1, %v1540_v45 }
 0x135   : > { %v581_v50 = vadd.f32 %v1172_v44, %v1150_v43  ;;  %1225 = vmatmul.mubr.msk.f32.gmra.mrb[2].mxu0 (!%p1110_p7), %vm613_vm0, %v596_v61  ;;  %v1538_v44 = vmov (!%p1110_p7), 0.0|0.0  }
 0x136   : > { %1227 = vmatprep.mubr.msk.f32.mxu0 (!%p1110_p7), %vm613_vm0, %v597_v62  ;;  %1288 = vmatprep.subr.bf16.mxu1 (!%p1110_p7), %v1538_v44 }
 0x137   : > { %v586_v51 = vadd.f32 %v581_v50, %v233_v47 }
 0x139   : > { %587 = vst [vmem:[#allocation2] sm:$0xff] %v586_v51  ;;  %1228 = vmatmul.mubr.msk.f32.gmra.mrb[4].mxu0 (!%p1110_p7), %vm613_vm0, %v598_v63 }
 0x13a   : > { %1230 = vmatprep.mubr.msk.f32.mxu0 %vm613_vm0, %v599_v0 }
 0x13d   : > { %1231 = vmatmul.mubr.msk.f32.gmra.mrb[6].mxu0 %vm613_vm0, %v600_v1 }
 0x13e   : > { %1233 = vmatprep.mubr.msk.f32.mxu0 %vm613_vm0, %v601_v2 }
 0x140   : > { %v1837_v40 = vld [vmem:[#allocation2] sm:$0xff] }
 0x141   : > { %1234 = vmatmul.mubr.msk.f32.gmra.mrb[8].mxu0 %vm613_vm0, %v602_v3  ;;  %v807_v43 = vmul.f32 %v1837_v40, %v1837_v40 }
 0x142   : > { %1236 = vmatprep.mubr.msk.f32.mxu0 %vm613_vm0, %v603_v4 }
 0x145   : > { %1237 = vmatmul.mubr.msk.f32.gmra.mrb[10].mxu0 %vm613_vm0, %v604_v5 }
 0x146   : > { %1239 = vmatprep.mubr.msk.f32.mxu0 %vm613_vm0, %v605_v6 }
 0x149   : > { %1240 = vmatmul.mubr.msk.f32.gmra.mrb[12].mxu0 %vm613_vm0, %v606_v7 }
 0x14a   : > { %1242 = vmatprep.mubr.msk.f32.mxu0 %vm613_vm0, %v607_v8 }
 0x14d   : > { %1243 = vmatmul.mubr.msk.f32.gmra.mrb[14].mxu0 %vm613_vm0, %v608_v9 }
 0x204   : > { %v1777_v10 = vpop.f32.mrb[0].mxu0 }
 0x205   : > { %v1779_v11 = vpop.f32.mrb[1].mxu0  ;;  %v814_v15 = vmul.f32 %v1777_v10, %v1777_v10 }
 0x206   : > { %v813_v12 = vmul.f32 %v1779_v11, %v1779_v11 }
 0x208   : > { %829 = vadd.xlane.f32.xlu0 %v813_v12  ;;  %v1783_v13 = vpop.f32.mrb[2].mxu0 }
 0x209   : > { %v1785_v14 = vpop.f32.mrb[3].mxu0  ;;  %v816_v18 = vmul.f32 %v1783_v13, %v1783_v13 }
 0x20a   : > { %v815_v16 = vmul.f32 %v1785_v14, %v1785_v14 }
 0x20c   : > { %831 = vadd.xlane.f32.xlu0 %v814_v15  ;;  %833 = vadd.xlane.f32.xlu1 %v815_v16  ;;  %v1791_v17 = vpop.f32.mrb[4].mxu0 }
 0x20d   : > { %v1795_v19 = vpop.f32.mrb[5].mxu0  ;;  %v818_v22 = vmul.f32 %v1791_v17, %v1791_v17 }
 0x20e   : > { %v817_v20 = vmul.f32 %v1795_v19, %v1795_v19 }
 0x210   : > { %835 = vadd.xlane.f32.xlu1 %v816_v18  ;;  %837 = vadd.xlane.f32.xlu0 %v817_v20  ;;  %v1799_v21 = vpop.f32.mrb[6].mxu0 }
 0x211   : > { %v1803_v23 = vpop.f32.mrb[7].mxu0  ;;  %v820_v26 = vmul.f32 %v1799_v21, %v1799_v21 }
 0x212   : > { %v819_v24 = vmul.f32 %v1803_v23, %v1803_v23 }
 0x214   : > { %839 = vadd.xlane.f32.xlu1 %v818_v22  ;;  %841 = vadd.xlane.f32.xlu0 %v819_v24  ;;  %v1807_v25 = vpop.f32.mrb[8].mxu0 }
 0x215   : > { %v1811_v27 = vpop.f32.mrb[9].mxu0  ;;  %v822_v30 = vmul.f32 %v1807_v25, %v1807_v25 }
 0x216   : > { %v821_v28 = vmul.f32 %v1811_v27, %v1811_v27 }
 0x218   : > { %843 = vadd.xlane.f32.xlu1 %v820_v26  ;;  %845 = vadd.xlane.f32.xlu0 %v821_v28  ;;  %v1815_v29 = vpop.f32.mrb[10].mxu0 }
 0x219   : > { %v1819_v31 = vpop.f32.mrb[11].mxu0  ;;  %v824_v34 = vmul.f32 %v1815_v29, %v1815_v29 }
 0x21a   : > { %v823_v32 = vmul.f32 %v1819_v31, %v1819_v31 }
 0x21c   : > { %847 = vadd.xlane.f32.xlu1 %v822_v30  ;;  %849 = vadd.xlane.f32.xlu0 %v823_v32  ;;  %v1823_v33 = vpop.f32.mrb[12].mxu0 }
 0x21d   : > { %v1827_v35 = vpop.f32.mrb[13].mxu0  ;;  %v826_v38 = vmul.f32 %v1823_v33, %v1823_v33 }
 0x21e   : > { %v825_v36 = vmul.f32 %v1827_v35, %v1827_v35 }
 0x220   : > { %851 = vadd.xlane.f32.xlu1 %v824_v34  ;;  %853 = vadd.xlane.f32.xlu0 %v825_v36  ;;  %v1831_v37 = vpop.f32.mrb[14].mxu0 }
 0x221   : > { %v1835_v39 = vpop.f32.mrb[15].mxu0  ;;  %v828_v42 = vmul.f32 %v1831_v37, %v1831_v37 }
 0x222   : > { %v827_v41 = vmul.f32 %v1835_v39, %v1835_v39 }
 0x224   : > { %855 = vadd.xlane.f32.xlu1 %v826_v38  ;;  %857 = vadd.xlane.f32.xlu0 %v827_v41 }
 0x228   : > { %859 = vadd.xlane.f32.xlu1 %v828_v42  ;;  %808 = vadd.xlane.f32.xlu0 %v807_v43 }
 0x295   : > { %v830_v46 = vpop.xlane.xlu0 %829 }
 0x296   : > { %v861_v47 = vadd.f32 1e-12, %v830_v46 }
 0x298   : > { %1400 = vrsqrt.f32 %v861_v47 }
 0x299   : > { %v832_v48 = vpop.xlane.xlu0 %831  ;;  %v834_v49 = vpop.xlane.xlu1 %833 }
 0x29a   : > { %v862_v50 = vadd.f32 1e-12, %v832_v48  ;;  %v863_v51 = vadd.f32 1e-12, %v834_v49 }
 0x29c   : > { %1402 = vrsqrt.f32 %v862_v50 }
 0x29d   : > { %v836_v52 = vpop.xlane.xlu1 %835  ;;  %v838_v53 = vpop.xlane.xlu0 %837  ;;  %1404 = vrsqrt.f32 %v863_v51 }
 0x29e   : > { %v864_v54 = vadd.f32 1e-12, %v836_v52  ;;  %v865_v55 = vadd.f32 1e-12, %v838_v53 }
 0x2a0   : > { %1406 = vrsqrt.f32 %v864_v54 }
 0x2a1   : > { %v840_v56 = vpop.xlane.xlu1 %839  ;;  %v842_v57 = vpop.xlane.xlu0 %841  ;;  %1408 = vrsqrt.f32 %v865_v55 }
 0x2a2   : > { %v866_v58 = vadd.f32 1e-12, %v840_v56  ;;  %v867_v59 = vadd.f32 1e-12, %v842_v57  ;;  %v1401_v60 = vpop.eup %1400 }
 0x2a3   : > { %v893_v2 = vmul.f32 %v1401_v60, %v1779_v11 }
 0x2a4   : > { %1410 = vrsqrt.f32 %v866_v58 }
 0x2a5   : > { %v844_v61 = vpop.xlane.xlu1 %843  ;;  %v846_v62 = vpop.xlane.xlu0 %845  ;;  %1412 = vrsqrt.f32 %v867_v59 }
 0x2a6   : > { %v1403_v63 = vpop.eup %1402  ;;  %v868_v0 = vadd.f32 1e-12, %v844_v61  ;;  %v869_v1 = vadd.f32 1e-12, %v846_v62 }
 0x2a7   : > { %v894_v3 = vmul.f32 %v1403_v63, %v1777_v10  ;;  %v1405_v4 = vpop.eup %1404 }
 0x2a8   : > { %1414 = vrsqrt.f32 %v868_v0  ;;  %v895_v15 = vmul.f32 %v1405_v4, %v1785_v14 }
 0x2a9   : > { %v848_v5 = vpop.xlane.xlu1 %847  ;;  %v850_v6 = vpop.xlane.xlu0 %849  ;;  %v1289_v7 = vpack.c.bf16 %v894_v3, %v893_v2  ;;  %1416 = vrsqrt.f32 %v869_v1 }
 0x2aa   : > { %v1407_v8 = vpop.eup %1406  ;;  %v870_v9 = vadd.f32 1e-12, %v848_v5  ;;  %v871_v12 = vadd.f32 1e-12, %v850_v6 }
 0x2ab   : > { %1290 = vmatpush3.bf16.xpose.msra.mxu1 %v1289_v7  ;;  %v896_v16 = vmul.f32 %v1407_v8, %v1783_v13  ;;  %v1409_v18 = vpop.eup %1408 }
 0x2ac   : > { %1418 = vrsqrt.f32 %v870_v9  ;;  %1291 = vmatprep.subr.bf16.mxu1 %v1538_v44  ;;  %v897_v28 = vmul.f32 %v1409_v18, %v1795_v19 }
 0x2ad   : > { %v852_v11 = vpop.xlane.xlu1 %851  ;;  %v854_v10 = vpop.xlane.xlu0 %853  ;;  %v1292_v20 = vpack.c.bf16 %v896_v16, %v895_v15  ;;  %1420 = vrsqrt.f32 %v871_v12 }
 0x2ae   : > { %v1411_v22 = vpop.eup %1410  ;;  %v872_v24 = vadd.f32 1e-12, %v852_v11  ;;  %v873_v26 = vadd.f32 1e-12, %v854_v10 }
 0x2af   : > { %v898_v30 = vmul.f32 %v1411_v22, %v1791_v17  ;;  %v1413_v32 = vpop.eup %1412 }
 0x2b0   : > { %1422 = vrsqrt.f32 %v872_v24  ;;  %v899_v42 = vmul.f32 %v1413_v32, %v1803_v23 }
 0x2b1   : > { %v856_v14 = vpop.xlane.xlu1 %855  ;;  %v858_v34 = vpop.xlane.xlu0 %857  ;;  %v1295_v13 = vpack.c.bf16 %v898_v30, %v897_v28  ;;  %1424 = vrsqrt.f32 %v873_v26 }
 0x2b2   : > { %v1415_v36 = vpop.eup %1414  ;;  %v874_v38 = vadd.f32 1e-12, %v856_v14  ;;  %v875_v41 = vadd.f32 1e-12, %v858_v34 }
 0x2b3   : > { %1293 = vmatpush3.bf16.xpose.msra.mxu1 %v1292_v20  ;;  %v900_v43 = vmul.f32 %v1415_v36, %v1799_v21  ;;  %v1417_v45 = vpop.eup %1416 }
 0x2b4   : > { %1426 = vrsqrt.f32 %v874_v38  ;;  %1294 = vmatprep.subr.bf16.mxu1 %v1538_v44  ;;  %v901_v48 = vmul.f32 %v1417_v45, %v1811_v27 }
 0x2b5   : > { %v860_v19 = vpop.xlane.xlu1 %859  ;;  %v1298_v17 = vpack.c.bf16 %v900_v43, %v899_v42  ;;  %1428 = vrsqrt.f32 %v875_v41 }
 0x2b6   : > { %v1419_v46 = vpop.eup %1418  ;;  %v876_v47 = vadd.f32 1e-12, %v860_v19 }
 0x2b7   : > { %v902_v49 = vmul.f32 %v1419_v46, %v1807_v25  ;;  %v1421_v50 = vpop.eup %1420 }
 0x2b8   : > { %1430 = vrsqrt.f32 %v876_v47  ;;  %v903_v21 = vmul.f32 %v1421_v50, %v1819_v31  ;;  %v809_v31 = vpop.xlane.xlu0 %808 }
 0x2b9   : > { %v1301_v51 = vpack.c.bf16 %v902_v49, %v901_v48 }
 0x2ba   : > { %v1423_v52 = vpop.eup %1422 }
 0x2bb   : > { %1296 = vmatpush3.bf16.xpose.msra.mxu1 %v1295_v13  ;;  %v904_v23 = vmul.f32 %v1423_v52, %v1815_v29  ;;  %v1425_v53 = vpop.eup %1424 }
 0x2bc   : > { %1297 = vmatprep.subr.bf16.mxu1 %v1538_v44  ;;  %v905_v56 = vmul.f32 %v1425_v53, %v1827_v35  ;;  %v810_v35 = vadd.f32 1e-12, %v809_v31 }
 0x2bd   : > { %v1304_v54 = vpack.c.bf16 %v904_v23, %v903_v21 }
 0x2be   : > { %v1427_v55 = vpop.eup %1426  ;;  %1432 = vrsqrt.f32 %v810_v35 }
 0x2bf   : > { %v906_v27 = vmul.f32 %v1427_v55, %v1823_v33  ;;  %v1429_v57 = vpop.eup %1428 }
 0x2c0   : > { %v907_v59 = vmul.f32 %v1429_v57, %v1835_v39 }
 0x2c1   : > { %v1307_v25 = vpack.c.bf16 %v906_v27, %v905_v56 }
 0x2c2   : > { %v1431_v58 = vpop.eup %1430 }
 0x2c3   : > { %1299 = vmatpush3.bf16.xpose.msra.mxu1 %v1298_v17  ;;  %v908_v60 = vmul.f32 %v1431_v58, %v1831_v37  ;;  %v980_v37 = vlaneseq }
 0x2c4   : > { %1300 = vmatprep.subr.bf16.mxu1 %v1538_v44 }
 0x2c5   : > { %v1310_v29 = vpack.c.bf16 %v908_v60, %v907_v59  ;;  %v981_v61 = vand.u32 127, %v980_v37 }
 0x2c7   : > { %vm982_vm2 = vcmp.lt.s32.totalorder %v981_v61, 5 }
 0x2c8   : > { %v1433_v33 = vpop.eup %1432 }
 0x2c9   : > { %v812_v39 = vmul.f32 %v1433_v33, %v1837_v40 }
 0x2cb   : > { %1302 = vmatpush3.bf16.xpose.msra.mxu1 %v1301_v51 }
 0x2cc   : > { %1303 = vmatprep.subr.bf16.mxu1 %v1538_v44 }
 0x2d3   : > { %1305 = vmatpush3.bf16.xpose.msra.mxu1 %v1304_v54 }
 0x2d4   : > { %1306 = vmatprep.subr.bf16.mxu1 %v1538_v44 }
 0x2db   : > { %1308 = vmatpush3.bf16.xpose.msra.mxu1 %v1307_v25 }
 0x2dc   : > { %1309 = vmatprep.subr.bf16.mxu1 %v1538_v44 }
 0x2e3   : > { %1311 = vmatpush3.bf16.xpose.msra.mxu1 %v1310_v29 }
 0x2ea   : > { %1278 = vmatmul.mubr.f32.vlgmr.msra.gmra.mrb[0].mxu1 %v812_v39 }
 0x3bd   : > { %v975_v62 = vpop.f32.mrb[0].mxu1 }
 0x3be   : > { %v979_v63 = vmul.f32 100.0, %v975_v62  ;;  %v1279_v0 = vpop.f32.mrb[1].mxu1 }
 0x3c0   : > { %v983_v1 = vsel %vm982_vm2, %v979_v63, -1e+30 }
 0x3c1   : > { %984 = vmax.xlane.f32.xlu1 %v983_v1 }
 0x44e   : > { %v985_v2 = vpop.xlane.xlu1 %984 }
 0x44f   : > { %v986_v3 = vsub.f32 %v983_v1, %v985_v2 }
 0x451   : > { %v987_v4 = vmul.f32 1.442695, %v986_v3 }
 0x453   : > { %1434 = vpow2.f32 %v987_v4 }
 0x45d   : > { %v1435_v5 = vpop.eup %1434 }
 0x45e   : > { %989 = vadd.xlane.f32.xlu0 %v1435_v5 }
 0x4eb   : > { %v990_v44 = vpop.xlane.xlu0 %989 }
 0x4ec   : > { %1436 = vrcp.f32 %v990_v44 }
 0x4f6   : > { %v1437_v6 = vpop.eup %1436 }
 0x4f7   : > { %v992_v7 = vmul.f32 %v1437_v6, %v1435_v5 }
 0x4f9   : > { %993 = vst [vmem:[#allocation6] sm:$0xff] %v992_v7 }
 0x4fa PF: > { %p1323_p4 = scmp.eq.s32.totalorder %s1586_s19, 5  ;;  %s1541_s6 = smov [#allocation6]  }
 0x4fb   : > { %s1001_s7 = sshll.u32 %s1541_s6, 4  ;;  %s1002_s7 = int_to_ptr.vmem [resolvable:$true] %s1001_s7 }
 0x4fc   : > { %s1468_s24 = scalar_lea.vmem %s1002_s7, 128  ;;  %p1475_p12 = scmp.lt.s32.totalorder %s1002_s7, %s1002_s7 }
 0x4fd   : > { %p1469_p5 = scmp.ne.s32.totalorder %s1002_s7, %s1468_s24  ;;  %p1476_p0 = scmp.lt.s32.totalorder %s1468_s24, %s1468_s24 }
 0x4ff   : > { %p1470_p6 = pnand %p1469_p5, %p1323_p4  ;;  %p1477_p1 = por %p1476_p0, %p1475_p12 }
 0x501   : > { %p1471_p10 = pneg %p1470_p6 }
 0x503   : > { %p1478_p2 = pnand %p1477_p1, %p1471_p10 }
 0x505   : > { %1481 = shalt.err (!%p1478_p2)
}
 0x506   : > { %s1482_s12 = scalar_lea.hbm %s1910_s4, 128 }
 0x507   : > { %p1483_p11 = scmp.ne.s32.totalorder %s1910_s4, %s1482_s12  ;;  %p1488_p9 = scmp.lt.u32.totalorder %s1482_s12, %s1910_s4 }
 0x509   : > { %p1484_p13 = pnand %p1483_p11, %p1323_p4 }
 0x50b   : > { %p1485_p3 = pneg %p1484_p13 }
 0x50d   : > { %p1490_p8 = pnand %p1488_p9, %p1485_p3 }
 0x50f   : > { %1493 = shalt.err (!%p1490_p8)
}
 0x510   : > { %1315 = dma.vmem_to_hbm [thread:$0]  (%p1323_p4), %s1002_s7, 128, %s1910_s4, [#allocation5]  }
 0x511   : > { %1515 = dma.done.wait (%p1323_p4), [#allocation5], 128  }
 0x512   : > { %1517 = vsyncadd (%p1323_p4), [#allocation5], 4294967168 }
 0x513 PF: > { %p15_p7 = scmp.ge.s32.totalorder %s1589_s20, 8   ;;  %s1914_s15 = smov %s1524_s16 }
 0x514   : > { %s1915_s16 = smov %s1528_s17  ;;  %s1916_s17 = smov %s1599_s23 }
 0x515   : > { %s1917_s18 = smov %s1589_s20  ;;  %17 = sbr.rel (!%p15_p7) target bundleno = 4 (0x4), region = 84 }
 0x51c   :  { %1014 = vsyncpa [#allocation4], 1 }
 0x51d   :  { %1016 = vsyncpa [#allocation4 + $0x1], 1 }
 0x51e   :  { %1017 = vsyncpa [#allocation5], 1 }
 0x51f   :  { %1019 = vsyncpa [#allocation5 + $0x1], 1 }

</bundles_post_ra>
